<compile_context>
chip_gen: v5e
topology: v5e:2x2
jax: 0.10.0
libtpu: 0.0.40
codegen_flags: <defaults>
</compile_context>

<pallas_src>
import functools

import jax
import jax.numpy as jnp
from jax import lax
from jax.experimental import pallas as pl
from jax.experimental.pallas import tpu as pltpu


# ---------------------------------------------------------------------------
# Pallas kernel
# ---------------------------------------------------------------------------
def _ucbn_kernel(x_ref, condT_ref, w1s_ref, b1s_ref, w2s_ref, pcs_ref, o_ref,
                 *, latent_dim, batch, inv_m, eps):
    # x block: (N, ct, HW) -- channels on sublanes, spatial on lanes.
    x = x_ref[...].astype(jnp.float32)

    # ---- training-mode BN stats per channel over (N, H, W), two-pass ------
    xs = jnp.sum(x, axis=0)                                    # (ct, HW)
    mean = jnp.sum(xs, axis=1, keepdims=True) * inv_m          # (ct, 1)
    d = x - mean                                               # centered, reused
    ds = jnp.sum(d * d, axis=0)                                # (ct, HW)
    var = jnp.sum(ds, axis=1, keepdims=True) * inv_m           # (ct, 1)
    inv_std = lax.rsqrt(var + eps)                             # (ct, 1)  EUP

    # ---- gain / bias MLPs (stacked first-layer matmul on the MXU) ---------
    h = jnp.maximum(
        jnp.dot(w1s_ref[...], condT_ref[...],
                preferred_element_type=jnp.float32) + b1s_ref[...], 0.0)   # (2L, N)
    w2 = w2s_ref[...]                                          # (2, ct, L)
    pcs = pcs_ref[...]                                         # (4, ct, 1)
    # '+1' is folded into the gain branch bias (pcs[0] = b2g + 1).
    gain1 = jnp.dot(w2[0], h[:latent_dim, :],
                    preferred_element_type=jnp.float32) + pcs[0]           # (ct, N) = 1 + g
    bias = jnp.dot(w2[1], h[latent_dim:, :],
                   preferred_element_type=jnp.float32) + pcs[1]            # (ct, N) = b
    bn_w, bn_b = pcs[2], pcs[3]                                # (ct, 1)

    # ---- fold BN affine + self-modulation into per-(c, n) scale/shift -----
    A = (bn_w * inv_std) * gain1                               # (ct, N)
    B = bn_b * gain1 + bias                                    # (ct, N)

    # ---- apply: one FMA per element, lane-broadcast per batch slab --------
    for n in range(batch):
        o_ref[n] = (d[n] * A[:, n:n + 1] + B[:, n:n + 1]).astype(o_ref.dtype)


# ---------------------------------------------------------------------------
# Wrapper (layout plumbing + tiny parameter packing only)
# ---------------------------------------------------------------------------
@functools.partial(jax.jit, static_argnames=("eps",))
def unconditional_batch_norm_forward(x_nchw, condition, params, eps=1e-5):
    N, C, H, W = x_nchw.shape
    L = condition.shape[1]
    HW = H * W

    # Free reshape: NCHW -> (N, C, HW).  No activation relayout on either side.
    # (For very small HW this layout is not lane-dense; large GAN feature maps
    #  have HW as a multiple of 128.)
    x3 = x_nchw.reshape(N, C, HW)

    # Tiny parameter packing (compiled once under jit; in a real model these
    # would be precomputed at parameter-init time).
    condT = jnp.transpose(condition, (1, 0)).astype(jnp.float32)            # (L, N)
    w1s = jnp.concatenate([params["w1g"], params["w1b"]], axis=0)           # (2L, L)
    b1s = jnp.concatenate([params["b1g"], params["b1b"]], axis=0)[:, None]  # (2L, 1)
    w2s = jnp.stack([params["w2g"], params["w2b"]], axis=0)                 # (2, C, L)
    pcs = jnp.stack([params["b2g"] + 1.0,        # '+1' gain offset folded in
                     params["b2b"],
                     params["bn_w"],
                     params["bn_b"]], axis=0)[:, :, None]                   # (4, C, 1)
    w1s = w1s.astype(jnp.float32)
    b1s = b1s.astype(jnp.float32)
    w2s = w2s.astype(jnp.float32)
    pcs = pcs.astype(jnp.float32)

    # ---- channel tile from a VMEM budget -----------------------------------
    vmem_limit = 48 * 1024 * 1024            # explicit; below v7x's 64 MiB physical
    budget = vmem_limit // 2                 # headroom for params / temporaries
    per_chan_bytes = 2 * 2 * N * HW * x3.dtype.itemsize  # (in + out), double-buffered
    max_ct = max(8, budget // max(per_chan_bytes, 1))

    if C % 8 == 0:
        cands = [k for k in range(8, C + 1, 8) if C % k == 0 and k <= max_ct]
        if C >= 16:                          # >= 2 grid steps: both v7x TCs busy
            cands = [k for k in cands if k <= C // 2] or cands
        ct = max(cands) if cands else 8
    else:
        ct = C                               # block_shape must equal the full dim
    grid = (C // ct,)                        # ct | C by construction: no ragged tile

    kernel = functools.partial(_ucbn_kernel, latent_dim=L, batch=N,
                               inv_m=1.0 / float(N * HW), eps=float(eps))

    chan = lambda c: (0, c, 0)
    full = lambda c: (0, 0)

    out3 = pl.pallas_call(
        kernel,
        out_shape=jax.ShapeDtypeStruct((N, C, HW), x3.dtype),
        grid_spec=pltpu.PrefetchScalarGridSpec(
            num_scalar_prefetch=0,
            grid=grid,
            in_specs=[
                pl.BlockSpec((N, ct, HW), chan),     # x (HW on the lane axis)
                pl.BlockSpec((L, N), full),          # condition^T
                pl.BlockSpec((2 * L, L), full),      # stacked first-layer weights
                pl.BlockSpec((2 * L, 1), full),      # stacked first-layer biases
                pl.BlockSpec((2, ct, L), chan),      # stacked second-layer weights
                pl.BlockSpec((4, ct, 1), chan),      # packed per-channel params
            ],
            out_specs=pl.BlockSpec((N, ct, HW), chan),
        ),
        compiler_params=pltpu.CompilerParams(
            dimension_semantics=("parallel",),
            vmem_limit_bytes=vmem_limit,
        ),
    )(x3, condT, w1s, b1s, w2s, pcs)

    return out3.reshape(N, C, H, W)


# ---------------------------------------------------------------------------
# Pure-JAX reference (PyTorch training-mode forward semantics)
# ---------------------------------------------------------------------------
def _ref_forward(x, cond, p, eps=1e-5):
    g = jax.nn.relu(cond @ p["w1g"].T + p["b1g"]) @ p["w2g"].T + p["b2g"]  # (N, C)
    b = jax.nn.relu(cond @ p["w1b"].T + p["b1b"]) @ p["w2b"].T + p["b2b"]  # (N, C)
    mean = jnp.mean(x, axis=(0, 2, 3), keepdims=True)
    var = jnp.mean((x - mean) ** 2, axis=(0, 2, 3), keepdims=True)         # biased
    xhat = (x - mean) * lax.rsqrt(var + eps)
    bn = xhat * p["bn_w"][None, :, None, None] + p["bn_b"][None, :, None, None]
    return bn * (1.0 + g[:, :, None, None]) + b[:, :, None, None]


# ---------------------------------------------------------------------------
if __name__ == "__main__":
    N, C, H, W = 2, 4, 16, 16
    L = 32  # latent_dim

    key = jax.random.PRNGKey(0)
    ks = jax.random.split(key, 12)
    params = dict(
        w1g=jax.random.normal(ks[0], (L, L), jnp.float32) * 0.2,
        b1g=jax.random.normal(ks[1], (L,), jnp.float32) * 0.1,
        w2g=jax.random.normal(ks[2], (C, L), jnp.float32) * 0.2,
        b2g=jax.random.normal(ks[3], (C,), jnp.float32) * 0.1,
        w1b=jax.random.normal(ks[4], (L, L), jnp.float32) * 0.2,
        b1b=jax.random.normal(ks[5], (L,), jnp.float32) * 0.1,
        w2b=jax.random.normal(ks[6], (C, L), jnp.float32) * 0.2,
        b2b=jax.random.normal(ks[7], (C,), jnp.float32) * 0.1,
        bn_w=1.0 + 0.1 * jax.random.normal(ks[8], (C,), jnp.float32),
        bn_b=0.1 * jax.random.normal(ks[9], (C,), jnp.float32),
    )
    x = jax.random.normal(ks[10], (N, C, H, W), jnp.float32)
    cond = jax.random.normal(ks[11], (N, L), jnp.float32)

    # TODO(synk): BatchNorm2d's running_mean/running_var momentum update (a
    # training-mode buffer side effect) and the unused registered buffers
    # mu/sigma are not materialized; they do not affect the forward output.
    out = jax.block_until_ready(unconditional_batch_norm_forward(x, cond, params))

    ref = _ref_forward(x, cond, params)
    assert out.shape == (N, C, H, W), out.shape
    err = jnp.max(jnp.abs(out - ref))
    assert jnp.allclose(out, ref, atol=2e-3, rtol=2e-3), f"max abs err = {err}"

    print("KERNEL_OK")
</pallas_src>

<mosaic_0001>
module attributes {stable_mosaic.version = 11 : i64} {
  func.func @_ucbn_kernel(%arg0: i32, %arg1: memref<2x4x256xf32, #tpu.memory_space<vmem>>, %arg2: memref<32x2xf32, #tpu.memory_space<vmem>>, %arg3: memref<64x32xf32, #tpu.memory_space<vmem>>, %arg4: memref<64x1xf32, #tpu.memory_space<vmem>>, %arg5: memref<2x4x32xf32, #tpu.memory_space<vmem>>, %arg6: memref<4x4x1xf32, #tpu.memory_space<vmem>>, %arg7: memref<2x4x256xf32, #tpu.memory_space<vmem>>) attributes {dimension_semantics = [#tpu.dimension_semantics<parallel>], iteration_bounds = array<i64: 1>, scalar_prefetch = 0 : i64, scratch_operands = 0 : i64, tpu.core_type = #tpu.core_type<tc>, window_params = [{transform_indices = @transform_0, window_bounds = array<i64: 2, 4, 256>}, {pipeline_mode = #tpu.pipeline_mode<synchronous>, transform_indices = @transform_1, window_bounds = array<i64: 32, 2>}, {pipeline_mode = #tpu.pipeline_mode<synchronous>, transform_indices = @transform_2, window_bounds = array<i64: 64, 32>}, {pipeline_mode = #tpu.pipeline_mode<synchronous>, transform_indices = @transform_3, window_bounds = array<i64: 64, 1>}, {transform_indices = @transform_4, window_bounds = array<i64: 2, 4, 32>}, {transform_indices = @transform_5, window_bounds = array<i64: 4, 4, 1>}, {transform_indices = @transform_6, window_bounds = array<i64: 2, 4, 256>}]} {
    %c0 = arith.constant 0 : index
    %c0_0 = arith.constant 0 : index
    %c0_1 = arith.constant 0 : index
    %0 = vector.load %arg1[%c0, %c0_0, %c0_1] : memref<2x4x256xf32, #tpu.memory_space<vmem>>, vector<2x4x256xf32>
    %cst = arith.constant dense<0.000000e+00> : vector<4x256xf32>
    %1 = vector.multi_reduction <add>, %0, %cst [0] : vector<2x4x256xf32> to vector<4x256xf32>
    %cst_2 = arith.constant dense<0.000000e+00> : vector<4xf32>
    %2 = vector.multi_reduction <add>, %1, %cst_2 [1] : vector<4x256xf32> to vector<4xf32>
    %3 = vector.shape_cast %2 : vector<4xf32> to vector<4x1xf32>
    %cst_3 = arith.constant 0.001953125 : f32
    %4 = vector.broadcast %cst_3 : f32 to vector<4x1xf32>
    %5 = arith.mulf %3, %4 : vector<4x1xf32>
    %6 = vector.shape_cast %5 : vector<4x1xf32> to vector<1x4x1xf32>
    %7 = vector.broadcast %6 : vector<1x4x1xf32> to vector<2x4x256xf32>
    %8 = arith.subf %0, %7 : vector<2x4x256xf32>
    %9 = arith.mulf %8, %8 : vector<2x4x256xf32>
    %cst_4 = arith.constant dense<0.000000e+00> : vector<4x256xf32>
    %10 = vector.multi_reduction <add>, %9, %cst_4 [0] : vector<2x4x256xf32> to vector<4x256xf32>
    %cst_5 = arith.constant dense<0.000000e+00> : vector<4xf32>
    %11 = vector.multi_reduction <add>, %10, %cst_5 [1] : vector<4x256xf32> to vector<4xf32>
    %12 = vector.shape_cast %11 : vector<4xf32> to vector<4x1xf32>
    %cst_6 = arith.constant 0.001953125 : f32
    %13 = vector.broadcast %cst_6 : f32 to vector<4x1xf32>
    %14 = arith.mulf %12, %13 : vector<4x1xf32>
    %cst_7 = arith.constant 9.99999974E-6 : f32
    %15 = vector.broadcast %cst_7 : f32 to vector<4x1xf32>
    %16 = arith.addf %14, %15 : vector<4x1xf32>
    %17 = math.rsqrt %16 : vector<4x1xf32>
    %c0_8 = arith.constant 0 : index
    %c0_9 = arith.constant 0 : index
    %18 = vector.load %arg3[%c0_8, %c0_9] : memref<64x32xf32, #tpu.memory_space<vmem>>, vector<64x32xf32>
    %c0_10 = arith.constant 0 : index
    %c0_11 = arith.constant 0 : index
    %19 = vector.load %arg2[%c0_10, %c0_11] : memref<32x2xf32, #tpu.memory_space<vmem>>, vector<32x2xf32>
    %cst_12 = arith.constant dense<0.000000e+00> : vector<64x2xf32>
    %20 = tpu.matmul %18, %19, %cst_12 {dimension_numbers = #tpu.dot_dimension_numbers<[1], [0], [0], [1], [0, 0, 1, 1], [], []>} : vector<64x32xf32>, vector<32x2xf32>, vector<64x2xf32> -> vector<64x2xf32>
    %c0_13 = arith.constant 0 : index
    %c0_14 = arith.constant 0 : index
    %21 = vector.load %arg4[%c0_13, %c0_14] : memref<64x1xf32, #tpu.memory_space<vmem>>, vector<64x1xf32>
    %22 = vector.broadcast %21 : vector<64x1xf32> to vector<64x2xf32>
    %23 = arith.addf %20, %22 : vector<64x2xf32>
    %cst_15 = arith.constant 0.000000e+00 : f32
    %24 = vector.broadcast %cst_15 : f32 to vector<64x2xf32>
    %25 = arith.maximumf %23, %24 : vector<64x2xf32>
    %c0_16 = arith.constant 0 : index
    %c0_17 = arith.constant 0 : index
    %c0_18 = arith.constant 0 : index
    %26 = vector.load %arg5[%c0_16, %c0_17, %c0_18] : memref<2x4x32xf32, #tpu.memory_space<vmem>>, vector<2x4x32xf32>
    %c0_19 = arith.constant 0 : index
    %c0_20 = arith.constant 0 : index
    %c0_21 = arith.constant 0 : index
    %27 = vector.load %arg6[%c0_19, %c0_20, %c0_21] : memref<4x4x1xf32, #tpu.memory_space<vmem>>, vector<4x4x1xf32>
    %28 = vector.extract_strided_slice %26 {offsets = [0, 0, 0], sizes = [1, 4, 32], strides = [1, 1, 1]} : vector<2x4x32xf32> to vector<1x4x32xf32>
    %29 = vector.shape_cast %28 : vector<1x4x32xf32> to vector<4x32xf32>
    %30 = vector.extract_strided_slice %25 {offsets = [0, 0], sizes = [32, 2], strides = [1, 1]} : vector<64x2xf32> to vector<32x2xf32>
    %cst_22 = arith.constant dense<0.000000e+00> : vector<4x2xf32>
    %31 = tpu.matmul %29, %30, %cst_22 {dimension_numbers = #tpu.dot_dimension_numbers<[1], [0], [0], [1], [0, 0, 1, 1], [], []>} : vector<4x32xf32>, vector<32x2xf32>, vector<4x2xf32> -> vector<4x2xf32>
    %32 = vector.extract_strided_slice %27 {offsets = [0, 0, 0], sizes = [1, 4, 1], strides = [1, 1, 1]} : vector<4x4x1xf32> to vector<1x4x1xf32>
    %33 = vector.shape_cast %32 : vector<1x4x1xf32> to vector<4x1xf32>
    %34 = vector.broadcast %33 : vector<4x1xf32> to vector<4x2xf32>
    %35 = arith.addf %31, %34 : vector<4x2xf32>
    %36 = vector.extract_strided_slice %26 {offsets = [1, 0, 0], sizes = [1, 4, 32], strides = [1, 1, 1]} : vector<2x4x32xf32> to vector<1x4x32xf32>
    %37 = vector.shape_cast %36 : vector<1x4x32xf32> to vector<4x32xf32>
    %38 = vector.extract_strided_slice %25 {offsets = [32, 0], sizes = [32, 2], strides = [1, 1]} : vector<64x2xf32> to vector<32x2xf32>
    %cst_23 = arith.constant dense<0.000000e+00> : vector<4x2xf32>
    %39 = tpu.matmul %37, %38, %cst_23 {dimension_numbers = #tpu.dot_dimension_numbers<[1], [0], [0], [1], [0, 0, 1, 1], [], []>} : vector<4x32xf32>, vector<32x2xf32>, vector<4x2xf32> -> vector<4x2xf32>
    %40 = vector.extract_strided_slice %27 {offsets = [1, 0, 0], sizes = [1, 4, 1], strides = [1, 1, 1]} : vector<4x4x1xf32> to vector<1x4x1xf32>
    %41 = vector.shape_cast %40 : vector<1x4x1xf32> to vector<4x1xf32>
    %42 = vector.broadcast %41 : vector<4x1xf32> to vector<4x2xf32>
    %43 = arith.addf %39, %42 : vector<4x2xf32>
    %44 = vector.extract_strided_slice %27 {offsets = [2, 0, 0], sizes = [1, 4, 1], strides = [1, 1, 1]} : vector<4x4x1xf32> to vector<1x4x1xf32>
    %45 = vector.shape_cast %44 : vector<1x4x1xf32> to vector<4x1xf32>
    %46 = vector.extract_strided_slice %27 {offsets = [3, 0, 0], sizes = [1, 4, 1], strides = [1, 1, 1]} : vector<4x4x1xf32> to vector<1x4x1xf32>
    %47 = vector.shape_cast %46 : vector<1x4x1xf32> to vector<4x1xf32>
    %48 = arith.mulf %45, %17 : vector<4x1xf32>
    %49 = vector.broadcast %48 : vector<4x1xf32> to vector<4x2xf32>
    %50 = arith.mulf %49, %35 : vector<4x2xf32>
    %51 = vector.broadcast %47 : vector<4x1xf32> to vector<4x2xf32>
    %52 = arith.mulf %51, %35 : vector<4x2xf32>
    %53 = arith.addf %52, %43 : vector<4x2xf32>
    %54 = vector.extract_strided_slice %8 {offsets = [0, 0, 0], sizes = [1, 4, 256], strides = [1, 1, 1]} : vector<2x4x256xf32> to vector<1x4x256xf32>
    %55 = vector.shape_cast %54 : vector<1x4x256xf32> to vector<4x256xf32>
    %56 = vector.extract_strided_slice %50 {offsets = [0, 0], sizes = [4, 1], strides = [1, 1]} : vector<4x2xf32> to vector<4x1xf32>
    %57 = vector.broadcast %56 : vector<4x1xf32> to vector<4x256xf32>
    %58 = arith.mulf %55, %57 : vector<4x256xf32>
    %59 = vector.extract_strided_slice %53 {offsets = [0, 0], sizes = [4, 1], strides = [1, 1]} : vector<4x2xf32> to vector<4x1xf32>
    %60 = vector.broadcast %59 : vector<4x1xf32> to vector<4x256xf32>
    %61 = arith.addf %58, %60 : vector<4x256xf32>
    %c0_24 = arith.constant 0 : index
    %c0_25 = arith.constant 0 : index
    %c0_26 = arith.constant 0 : index
    %62 = vector.load %arg7[%c0_24, %c0_25, %c0_26] : memref<2x4x256xf32, #tpu.memory_space<vmem>>, vector<1x4x256xf32>
    %63 = vector.shape_cast %62 : vector<1x4x256xf32> to vector<4x256xf32>
    %64 = vector.shape_cast %61 : vector<4x256xf32> to vector<1x4x256xf32>
    tpu.vector_store %arg7[%c0_24, %c0_25, %c0_26], %64 {strides = array<i32>} : memref<2x4x256xf32, #tpu.memory_space<vmem>>, vector<1x4x256xf32>,
    %65 = vector.extract_strided_slice %8 {offsets = [1, 0, 0], sizes = [1, 4, 256], strides = [1, 1, 1]} : vector<2x4x256xf32> to vector<1x4x256xf32>
    %66 = vector.shape_cast %65 : vector<1x4x256xf32> to vector<4x256xf32>
    %67 = vector.extract_strided_slice %50 {offsets = [0, 1], sizes = [4, 1], strides = [1, 1]} : vector<4x2xf32> to vector<4x1xf32>
    %68 = vector.broadcast %67 : vector<4x1xf32> to vector<4x256xf32>
    %69 = arith.mulf %66, %68 : vector<4x256xf32>
    %70 = vector.extract_strided_slice %53 {offsets = [0, 1], sizes = [4, 1], strides = [1, 1]} : vector<4x2xf32> to vector<4x1xf32>
    %71 = vector.broadcast %70 : vector<4x1xf32> to vector<4x256xf32>
    %72 = arith.addf %69, %71 : vector<4x256xf32>
    %c1 = arith.constant 1 : index
    %c0_27 = arith.constant 0 : index
    %c0_28 = arith.constant 0 : index
    %73 = vector.load %arg7[%c1, %c0_27, %c0_28] : memref<2x4x256xf32, #tpu.memory_space<vmem>>, vector<1x4x256xf32>
    %74 = vector.shape_cast %73 : vector<1x4x256xf32> to vector<4x256xf32>
    %75 = vector.shape_cast %72 : vector<4x256xf32> to vector<1x4x256xf32>
    tpu.vector_store %arg7[%c1, %c0_27, %c0_28], %75 {strides = array<i32>} : memref<2x4x256xf32, #tpu.memory_space<vmem>>, vector<1x4x256xf32>,
    return
  }
  func.func @transform_0(%arg0: i32) -> (i32, i32, i32) {
    %c0_i32 = arith.constant 0 : i32
    %c0_i32_0 = arith.constant 0 : i32
    %c0_i32_1 = arith.constant 0 : i32
    return %c0_i32, %arg0, %c0_i32_0 : i32, i32, i32
  }
  func.func @transform_1(%arg0: i32) -> (i32, i32) {
    %c0_i32 = arith.constant 0 : i32
    %c0_i32_0 = arith.constant 0 : i32
    %c0_i32_1 = arith.constant 0 : i32
    return %c0_i32, %c0_i32_0 : i32, i32
  }
  func.func @transform_2(%arg0: i32) -> (i32, i32) {
    %c0_i32 = arith.constant 0 : i32
    %c0_i32_0 = arith.constant 0 : i32
    %c0_i32_1 = arith.constant 0 : i32
    return %c0_i32, %c0_i32_0 : i32, i32
  }
  func.func @transform_3(%arg0: i32) -> (i32, i32) {
    %c0_i32 = arith.constant 0 : i32
    %c0_i32_0 = arith.constant 0 : i32
    %c0_i32_1 = arith.constant 0 : i32
    return %c0_i32, %c0_i32_0 : i32, i32
  }
  func.func @transform_4(%arg0: i32) -> (i32, i32, i32) {
    %c0_i32 = arith.constant 0 : i32
    %c0_i32_0 = arith.constant 0 : i32
    %c0_i32_1 = arith.constant 0 : i32
    return %c0_i32, %arg0, %c0_i32_0 : i32, i32, i32
  }
  func.func @transform_5(%arg0: i32) -> (i32, i32, i32) {
    %c0_i32 = arith.constant 0 : i32
    %c0_i32_0 = arith.constant 0 : i32
    %c0_i32_1 = arith.constant 0 : i32
    return %c0_i32, %arg0, %c0_i32_0 : i32, i32, i32
  }
  func.func @transform_6(%arg0: i32) -> (i32, i32, i32) {
    %c0_i32 = arith.constant 0 : i32
    %c0_i32_0 = arith.constant 0 : i32
    %c0_i32_1 = arith.constant 0 : i32
    return %c0_i32, %arg0, %c0_i32_0 : i32, i32, i32
  }
}

</mosaic_0001>

<bundles_post_ra>
// kernel: unconditional_batch_norm_forward.1
= control target key start
LH: loop header
LB: loop body
LE: loop exit
PB: predicated region body
PF: predicated region fallthrough
CT: control target
= control target key end

     0   :  { %v381_v0 = vmov 0   ;;  %vm157_vm0 = vcmask 261120   ;;  %vm38_vm1 = vcmask 1043456   ;;  %s551_s3 = inlined_call_operand.vmem [shape: f32[64,1], index: 3, kind: input, shape index: {}]   ;;  %s552_s1 = inlined_call_operand.vmem [shape: f32[32,2], index: 1, kind: input, shape index: {}]   ;;  %s553_s2 = inlined_call_operand.vmem [shape: f32[64,32], index: 2, kind: input, shape index: {}]   ;;  %s554_s0 = inlined_call_operand.vmem [shape: f32[2,4,256], index: 0, kind: input, shape index: {}]   ;;  %s555_s5 = inlined_call_operand.vmem [shape: f32[4,4,1], index: 5, kind: input, shape index: {}]   ;;  %s556_s4 = inlined_call_operand.vmem [shape: f32[2,4,32], index: 4, kind: input, shape index: {}]   ;;  %s557_s6 = inlined_call_operand.vmem [shape: f32[2,4,256], index: 6, kind: output, shape index: {}]  }
   0x1   :  { %376 = vset.pattern.permute.xlu2 %v381_v0  ;;  %v111_v1 = vld [vmem:[%s551_s3 + $0x10] sm:$0xff]  ;;  %v108_v2 = vld [vmem:[%s552_s1 + $0x18] sm:$0xff]  ;;  %374 = vset.pattern.permute.xlu0 %v381_v0  ;;  %v106_v4 = vld [vmem:[%s552_s1 + $0x8] sm:$0xff] }
   0x2   :  { %v107_v3 = vld [vmem:[%s552_s1 + $0x10] sm:$0xff]  ;;  %129 = vperm.xlu2 %376, %v111_v1   ;;  %194 = vmatpush.msra.mxu0 %v108_v2  ;;  %v105_v5 = vld [vmem:[%s552_s1] sm:$0xff]  ;;  %v116_v6 = vld [vmem:[%s551_s3 + $0x38] sm:$0xff] }
   0x3   :  { %363 = vmatpush.msra.mxu1 %v108_v2  ;;  %364 = vmatpush.msra.mxu3 %v108_v2  ;;  %v112_v7 = vld [vmem:[%s551_s3 + $0x18] sm:$0xff]  ;;  %v97_v8 = vld [vmem:[%s553_s2] sm:$0xff]  ;;  %v102_v11 = vld [vmem:[%s553_s2 + $0x28] sm:$0xff] }
   0x4   :  { %195 = vmatpush.msra.mxu0 %v107_v3  ;;  %375 = vset.pattern.permute.xlu1 %v381_v0  ;;  %v100_v9 = vld [vmem:[%s553_s2 + $0x18] sm:$0xff]  ;;  %v449_v10 = vld [vmem:[%s554_s0] sm:$0xff]  ;;  %v460_v13 = vld [vmem:[%s554_s0 + $0x8] sm:$0xff] }
   0x5   :  { %365 = vmatpush.msra.mxu1 %v107_v3  ;;  %366 = vmatpush.msra.mxu3 %v107_v3  ;;  %v113_v12 = vld [vmem:[%s551_s3 + $0x20] sm:$0xff]  ;;  %27 = vst [vmem:[#allocation1] ss:$2 sm:$0xff] %v449_v10  ;;  %v115_v14 = vld [vmem:[%s551_s3 + $0x30] sm:$0xff]  ;;  %v114_v15 = vld [vmem:[%s551_s3 + $0x28] sm:$0xff] }
   0x6   :  { %196 = vmatpush.msra.mxu0 %v106_v4  ;;  %154 = vperm.xlu0 %374, %v116_v6   ;;  %31 = vst [vmem:[#allocation1 + $0x10] ss:$2 sm:$0xff] %v460_v13  ;;  %v98_v16 = vld [vmem:[%s553_s2 + $0x8] sm:$0xff]  ;;  %v101_v17 = vld [vmem:[%s553_s2 + $0x20] sm:$0xff]  ;;  %v103_v18 = vld [vmem:[%s553_s2 + $0x30] sm:$0xff] }
   0x7   :  { %367 = vmatpush.msra.mxu1 %v106_v4  ;;  %368 = vmatpush.msra.mxu3 %v106_v4  ;;  %v110_v19 = vld [vmem:[%s551_s3 + $0x8] sm:$0xff]  ;;  %v109_v20 = vld [vmem:[%s551_s3] sm:$0xff]  ;;  %v99_v21 = vld [vmem:[%s553_s2 + $0x10] sm:$0xff]  ;;  %v382_v4 = vmov 839922192  }
   0x8   :  { %197 = vmatpush.msra.mxu0 %v105_v5  ;;  %134 = vperm.xlu1 %375, %v112_v7   ;;  %v104_v22 = vld [vmem:[%s553_s2 + $0x38] sm:$0xff]  ;;  %v233_v46 = vld [vmem:[%s555_s5] sm:$0xf]  ;;  %v234_v50 = vld [vmem:[%s555_s5 + $0x4] sm:$0xf] }
   0x9   :  { %369 = vmatpush.msra.mxu1 %v105_v5  ;;  %370 = vmatpush.msra.mxu3 %v105_v5  ;;  %v231_v61 = vld [vmem:[%s556_s4] sm:$0xf]  ;;  %v53_v5 = vunpack.c.l.s4 %v382_v4 }
   0xa   :  { %352 = vmatmul.msk.f32.vlgmr.msra.gmra.mxu0 %vm157_vm0, %v97_v8  ;;  %355 = vmatmul.msk.f32.vlgmr.msra.gmra.mxu1 %vm157_vm0, %v100_v9 }
   0xb   :  { %357 = vmatmul.msk.f32.vlgmr.msra.gmra.mxu3 %vm157_vm0, %v102_v11  ;;  %139 = vperm.xlu2 %376, %v113_v12   ;;  %v515_v8 = vunpack.c.0.s8 %v53_v5  ;;  %v232_v12 = vld [vmem:[%s556_s4 + $0x4] sm:$0xf] }
   0xc   :  { %v28_v23 = vld.sshfl [vmem:[#allocation1] sm:$0xff pattern:$0x75316420]  ;;  %v29_v24 = vld.sshfl [vmem:[#allocation1 + $0x8] sm:$0xff pattern:$0x75316420] }
   0xd   :  { %v32_v25 = vld.sshfl [vmem:[#allocation1 + $0x10] sm:$0xff pattern:$0x75316420]  ;;  %v33_v26 = vld.sshfl [vmem:[#allocation1 + $0x18] sm:$0xff pattern:$0x75316420] }
   0xe   :  { %149 = vperm.xlu0 %374, %v115_v14   ;;  %v39_v27 = vsel %vm38_vm1, %v28_v23, 0.0  ;;  %v40_v28 = vsel %vm38_vm1, %v32_v25, 0.0  ;;  %v42_v29 = vsel %vm38_vm1, %v29_v24, 0.0  ;;  %v43_v30 = vsel %vm38_vm1, %v33_v26, 0.0 }
   0xf   :  { %v41_v31 = vadd.f32 %v40_v28, %v39_v27  ;;  %v44_v32 = vadd.f32 %v43_v30, %v42_v29 }
  0x10   :  { %144 = vperm.xlu1 %375, %v114_v15  }
  0x11   :  { %v45_v33 = vsel %vm38_vm1, %v41_v31, 0.0  ;;  %v46_v34 = vsel %vm38_vm1, %v44_v32, 0.0 }
  0x12   :  { %353 = vmatmul.msk.f32.gmra.mxu0 %vm157_vm0, %v98_v16  ;;  %356 = vmatmul.msk.f32.gmra.mxu1 %vm157_vm0, %v101_v17  ;;  %v47_v35 = vadd.f32 %v46_v34, %v45_v33 }
  0x13   :  { %358 = vmatmul.msk.f32.gmra.mxu3 %vm157_vm0, %v103_v18 }
  0x16   :  { %124 = vperm.xlu0 %374, %v110_v19  }
  0x18   :  { %119 = vperm.xlu1 %375, %v109_v20  }
  0x1a   :  { %354 = vmatmul.msk.f32.gmra.mxu0 %vm157_vm0, %v99_v21 }
  0x1b   :  { %359 = vmatmul.msk.f32.gmra.mxu3 %vm157_vm0, %v104_v22 }
  0x20   :  { %239 = vperm.xlu1 %375, %v233_v46  }
  0x28   :  { %267 = vperm.xlu1 %375, %v234_v50  }
  0x34   :  { %48 = vadd.xlane.f32.xlu2 %v47_v35 }
  0x5c   :  { %v130_v48 = vpop.permute.xlu2 %129 }
  0x65   :  { %v140_v62 = vpop.permute.xlu2 %139 }
  0x78   :  { %v155_v36 = vpop.permute.xlu0 %154 }
  0x7a   :  { %v135_v37 = vpop.permute.xlu1 %134 }
  0x80   :  { %v150_v41 = vpop.permute.xlu0 %149 }
  0x82   :  { %v145_v43 = vpop.permute.xlu1 %144 }
  0x87   :  { %v199_v38 = vpop.f32.mrf.mxu0  ;;  %v208_v39 = vpop.f32.mrf.mxu1 }
  0x88   :  { %v209_v40 = vadd.f32 %v208_v39, %v135_v37  ;;  %v125_v47 = vpop.permute.xlu0 %124 }
  0x8a   :  { %v226_v42 = vmax.f32 %v209_v40, 0.0  ;;  %v120_v49 = vpop.permute.xlu1 %119  ;;  %v235_v40 = vld [vmem:[%s555_s5 + $0x8] sm:$0xf] }
  0x8b   :  { %v200_v55 = vadd.f32 %v199_v38, %v120_v49 }
  0x8c   :  { %257 = vmatpush.msrb.mxu1 %v226_v42 }
  0x8d   :  { %v223_v58 = vmax.f32 %v200_v55, 0.0 }
  0x8e   :  { %v214_v44 = vpop.f32.mrf.mxu3 }
  0x8f   :  { %v202_v45 = vpop.f32.mrf.mxu0  ;;  %v215_v63 = vadd.f32 %v214_v44, %v145_v43  ;;  %v211_v1 = vpop.f32.mrf.mxu1  ;;  %v236_v43 = vld [vmem:[%s555_s5 + $0xc] sm:$0xf]  ;;  %v383_v44 = vmov 1  }
  0x90   :  { %v203_v52 = vadd.f32 %v202_v45, %v125_v47  ;;  %v212_v6 = vadd.f32 %v211_v1, %v140_v62  ;;  %377 = vset.pattern.permute.xlu2 %v383_v44  ;;  %378 = vset.pattern.permute.xlu0 %v383_v44 }
  0x91   :  { %v228_v7 = vmax.f32 %v215_v63, 0.0 }
  0x92   :  { %v224_v57 = vmax.f32 %v203_v52, 0.0  ;;  %v227_v9 = vmax.f32 %v212_v6, 0.0  ;;  %v240_v45 = vpop.permute.xlu1 %239 }
  0x96   :  { %v217_v51 = vpop.f32.mrf.mxu3 }
  0x97   :  { %v205_v53 = vpop.f32.mrf.mxu0  ;;  %v218_v59 = vadd.f32 %v217_v51, %v150_v41 }
  0x98   :  { %v206_v54 = vadd.f32 %v205_v53, %v130_v48 }
  0x99   :  { %v229_v2 = vmax.f32 %v218_v59, 0.0 }
  0x9a   :  { %v225_v56 = vmax.f32 %v206_v54, 0.0  ;;  %v268_v46 = vpop.permute.xlu1 %267 }
  0x9c   :  { %258 = vmatpush.msrb.mxu1 %v225_v56 }
  0x9e   :  { %v220_v60 = vpop.f32.mrf.mxu3  ;;  %259 = vmatpush.msrb.mxu1 %v224_v57 }
  0x9f   :  { %v221_v0 = vadd.f32 %v220_v60, %v155_v36 }
  0xa0   :  { %260 = vmatpush.msrb.mxu1 %v223_v58 }
  0xa1   :  { %v230_v3 = vmax.f32 %v221_v0, 0.0  ;;  %360 = vmatmul.msk.f32.vlgmr.msrb.gmra.mxu1 %vm157_vm0, %v231_v61 }
  0xa3   :  { %285 = vmatpush.msra.mxu2 %v230_v3 }
  0xa5   :  { %286 = vmatpush.msra.mxu2 %v229_v2 }
  0xa7   :  { %287 = vmatpush.msra.mxu2 %v228_v7  ;;  %v49_v11 = vpop.xlane.xlu2 %48 }
  0xa8   :  { %v50_v14 = vmul.f32 0.001953125, %v49_v11 }
  0xa9   :  { %288 = vmatpush.msra.mxu2 %v227_v9 }
  0xaa   :  { %v55_v15 = vperm.slane %v50_v14, %v515_v8  ;;  %361 = vmatmul.msk.f32.vlgmr.msra.gmra.mxu2 %vm157_vm0, %v232_v12 }
  0xac   :  { %v523_v16 = vsub.f32 %v449_v10, %v55_v15  ;;  %v58_v17 = vsub.f32 %v460_v13, %v55_v15 }
  0xae   :  { %v59_v18 = vmul.f32 %v523_v16, %v523_v16  ;;  %v60_v19 = vmul.f32 %v58_v17, %v58_v17 }
  0xb0   :  { %63 = vst [vmem:[#allocation1] ss:$2 sm:$0xff] %v59_v18 }
  0xb1   :  { %67 = vst [vmem:[#allocation1 + $0x10] ss:$2 sm:$0xff] %v60_v19 }
  0xb7   :  { %v64_v20 = vld.sshfl [vmem:[#allocation1] sm:$0xff pattern:$0x75316420]  ;;  %v65_v21 = vld.sshfl [vmem:[#allocation1 + $0x8] sm:$0xff pattern:$0x75316420] }
  0xb8   :  { %v68_v22 = vld.sshfl [vmem:[#allocation1 + $0x10] sm:$0xff pattern:$0x75316420]  ;;  %v69_v23 = vld.sshfl [vmem:[#allocation1 + $0x18] sm:$0xff pattern:$0x75316420] }
  0xb9   :  { %v74_v24 = vsel %vm38_vm1, %v64_v20, 0.0  ;;  %v75_v25 = vsel %vm38_vm1, %v68_v22, 0.0  ;;  %v77_v26 = vsel %vm38_vm1, %v65_v21, 0.0  ;;  %v78_v10 = vsel %vm38_vm1, %v69_v23, 0.0 }
  0xba   :  { %v76_v27 = vadd.f32 %v75_v25, %v74_v24  ;;  %v79_v13 = vadd.f32 %v78_v10, %v77_v26 }
  0xbc   :  { %v80_v28 = vsel %vm38_vm1, %v76_v27, 0.0  ;;  %v81_v29 = vsel %vm38_vm1, %v79_v13, 0.0 }
  0xbd   :  { %v82_v30 = vadd.f32 %v81_v29, %v80_v28 }
  0xbf   :  { %83 = vadd.xlane.f32.xlu0 %v82_v30 }
 0x11e   :  { %v262_v47 = vpop.f32.mrf.mxu1 }
 0x11f   :  { %v263_v48 = vadd.f32 %v262_v47, %v240_v45 }
 0x12d   :  { %v290_v51 = vpop.f32.mrf.mxu2 }
 0x12e   :  { %v291_v53 = vadd.f32 %v290_v51, %v268_v46 }
 0x132   :  { %v84_v31 = vpop.xlane.xlu0 %83 }
 0x133   :  { %v85_v32 = vmul.f32 0.001953125, %v84_v31 }
 0x135   :  { %v86_v33 = vadd.f32 1e-05, %v85_v32 }
 0x137   :  { %379 = vrsqrt.f32 %v86_v33  ;;  %vm93_vm3 = vweird.f32 %v86_v33 }
 0x13d   :  { %v380_v34 = vpop.eup %379 }
 0x13e   :  { %v88_v35 = vmul.f32 %v380_v34, %v86_v33  ;;  %vm94_vm2 = vweird.f32 %v380_v34 }
 0x13f   :  { %vm95_vm4 = vmor %vm93_vm3, %vm94_vm2 }
 0x140   :  { %v89_v36 = vmul.f32 %v380_v34, %v88_v35 }
 0x142   :  { %v90_v37 = vmul.f32 0.5, %v89_v36 }
 0x144   :  { %v91_v38 = vsub.f32 1.5, %v90_v37 }
 0x146   :  { %v92_v39 = vmul.f32 %v380_v34, %v91_v38 }
 0x148   :  { %v96_v41 = vsel %vm95_vm4, %v380_v34, %v92_v39 }
 0x149   :  { %v293_v42 = vmul.f32 %v235_v40, %v96_v41 }
 0x14b   :  { %296 = vperm.xlu1 %375, %v293_v42  }
 0x153   :  { %302 = vperm.xlu1 %375, %v236_v43  }
 0x1bd   :  { %v297_v49 = vpop.permute.xlu1 %296 }
 0x1be   :  { %v299_v50 = vmul.f32 %v297_v49, %v263_v48 }
 0x1c0   :  { %329 = vperm.xlu2 %377, %v299_v50   ;;  %309 = vperm.xlu1 %375, %v299_v50  }
 0x1c5   :  { %v303_v52 = vpop.permute.xlu1 %302 }
 0x1c6   :  { %v305_v54 = vmul.f32 %v303_v52, %v263_v48 }
 0x1c8   :  { %v306_v55 = vadd.f32 %v305_v54, %v291_v53 }
 0x1ca   :  { %338 = vperm.xlu0 %378, %v306_v55   ;;  %319 = vperm.xlu1 %375, %v306_v55  }
 0x21a   :  { %v330_v57 = vpop.permute.xlu2 %329 }
 0x21b   :  { %v334_v58 = vperm.slane %v330_v57, %v515_v8 }
 0x21d   :  { %v336_v62 = vmul.f32 %v334_v58, %v58_v17 }
 0x232   :  { %v310_v56 = vpop.permute.xlu1 %309 }
 0x233   :  { %v314_v59 = vperm.slane %v310_v56, %v515_v8 }
 0x235   :  { %v316_v63 = vmul.f32 %v314_v59, %v523_v16 }
 0x23c   :  { %v339_v60 = vpop.permute.xlu0 %338  ;;  %v320_v61 = vpop.permute.xlu1 %319 }
 0x23d   :  { %v343_v0 = vperm.slane %v339_v60, %v515_v8  ;;  %v324_v1 = vperm.slane %v320_v61, %v515_v8 }
 0x23f   :  { %v345_v2 = vadd.f32 %v343_v0, %v336_v62  ;;  %v326_v3 = vadd.f32 %v324_v1, %v316_v63 }
 0x241   :  { %362 = vst [vmem:[%s557_s6 + $0x8] sm:$0xff] %v345_v2 }
 0x242   :  { %327 = vst [vmem:[%s557_s6] sm:$0xff] %v326_v3 }

</bundles_post_ra>
